<compile_context>
chip_gen: v7x
topology: tpu7x:2x2x1
jax: 0.10.0
libtpu: 0.0.40
codegen_flags: <defaults>
</compile_context>

<pallas_src>
import jax
import jax.numpy as jnp
from jax.experimental import pallas as pl
from jax.experimental.pallas import tpu as pltpu


def _attention_kernel(w_ref, dec_ref, enc_ref, out_ref):
    # w_ref:   (D, E)        -- Linear weight, PyTorch (out, in) layout
    # dec_ref: (bn, 1, D)
    # enc_ref: (bn, L, E)
    # out_ref: (bn, 1, L)    -- lane-dense scores (softmax over L)
    w = w_ref[...]                                   # (D, E)
    dec = dec_ref[...][:, 0, :]                      # (bn, D)
    enc = enc_ref[...]                               # (bn, L, E)

    # Fold the projection weight into the decoder vector:
    #   v[b] = dec[b] @ W          (bn, D) @ (D, E) -> (bn, E)   (MXU)
    # (bias omitted: it only shifts every score of a batch by the same
    #  constant b . dec[b], which cancels in the softmax over L — exact.)
    v = jnp.dot(dec, w, preferred_element_type=jnp.float32)      # (bn, E) f32

    # score[b, 0, l] = sum_e v[b, e] * enc[b, l, e]  -> (bn, 1, L)
    # Batched contraction over the trailing E axes; no explicit transpose of
    # enc is needed and the result lands with L on the lane axis.
    v3 = v.astype(enc.dtype)[:, None, :]                         # (bn, 1, E)
    s = jnp.einsum("bke,ble->bkl", v3, enc,
                   preferred_element_type=jnp.float32)           # (bn, 1, L) f32

    # Softmax over L (the last / lane axis), all in f32.
    m = jnp.max(s, axis=-1, keepdims=True)
    e = jnp.exp(s - m)
    denom = jnp.sum(e, axis=-1, keepdims=True)
    out_ref[...] = (e * pl.reciprocal(denom, approx=True)).astype(out_ref.dtype)


def _pick_batch_block(n, l, e, d, itemsize):
    """Largest bn in {8,4,2,1} that divides N, keeps >=2 grid steps when
    possible (for cross-TensorCore sharding of the parallel axis), and whose
    double-buffered VMEM footprint stays comfortably under the scoped limit."""
    budget = 8 * 1024 * 1024  # conservative per-step VMEM budget (bytes)
    for bn in (8, 4, 2):
        # 2x buffering for enc/dec/out streams; weight is resident (single copy).
        per_step = 2 * bn * (l * e + d + l) * itemsize + d * e * itemsize
        if n % bn == 0 and n // bn >= 2 and per_step <= budget:
            return bn
    return 1


def attention_forward(encoder_output, decoder_output, src_mask, weight, bias):
    """encoder_output: (N, L, E); decoder_output: (N, 1, D); src_mask: (N, L)
    [unused by the reference forward]; weight: (D, E) PyTorch layout; bias: (D,)
    [cancels exactly under the softmax over L, so it is never read].
    Returns softmax scores of shape (N, L, 1)."""
    del src_mask  # reference forward() never applies it
    del bias      # exact: softmax over L is invariant to the per-batch shift b.dec
    N, L, E = encoder_output.shape
    D = weight.shape[0]

    bn = _pick_batch_block(N, L, E, D, encoder_output.dtype.itemsize)
    grid = (N // bn,)

    out = pl.pallas_call(
        _attention_kernel,
        out_shape=jax.ShapeDtypeStruct((N, 1, L), encoder_output.dtype),
        grid_spec=pltpu.PrefetchScalarGridSpec(
            num_scalar_prefetch=0,
            grid=grid,
            in_specs=[
                pl.BlockSpec((D, E), lambda i: (0, 0)),          # weight (VMEM-resident)
                pl.BlockSpec((bn, 1, D), lambda i: (i, 0, 0)),   # decoder_output
                pl.BlockSpec((bn, L, E), lambda i: (i, 0, 0)),   # encoder_output
            ],
            out_specs=pl.BlockSpec((bn, 1, L), lambda i: (i, 0, 0)),
        ),
        compiler_params=pltpu.CompilerParams(
            dimension_semantics=("parallel",)),
    )(weight, decoder_output, encoder_output)

    # Lane-dense (N, 1, L) -> module's (N, L, 1) layout (pure wrapper reshape).
    return out.reshape(N, L, 1)


def _reference(encoder_output, decoder_output, weight, bias):
    proj = jnp.einsum("nle,de->nld", encoder_output, weight) + bias
    score = jnp.einsum("nld,nd->nl", proj, decoder_output[:, 0, :])[..., None]
    return jax.nn.softmax(score, axis=1)


if __name__ == "__main__":
    N, L = 2, 8
    ENC_HIDDEN, DEC_HIDDEN = 32, 32

    key = jax.random.PRNGKey(0)
    k_enc, k_dec, k_w, k_b = jax.random.split(key, 4)

    encoder_output = jax.random.normal(k_enc, (N, L, ENC_HIDDEN), dtype=jnp.float32)
    decoder_output = jax.random.normal(k_dec, (N, 1, DEC_HIDDEN), dtype=jnp.float32)
    src_mask = jnp.ones((N, L), dtype=jnp.float32)  # unused by forward()

    # Deterministic "nn.Linear(encoder_hidden_size, decoder_hidden_size)" params.
    weight = jax.random.normal(k_w, (DEC_HIDDEN, ENC_HIDDEN), dtype=jnp.float32) * 0.1
    bias = jax.random.normal(k_b, (DEC_HIDDEN,), dtype=jnp.float32) * 0.1

    out = attention_forward(encoder_output, decoder_output, src_mask, weight, bias)
    out = jax.block_until_ready(out)

    ref = _reference(encoder_output, decoder_output, weight, bias)
    assert out.shape == (N, L, 1)
    # Approx EUP reciprocal in the softmax -> slightly looser tolerance than
    # exact division would need (the bias fold itself is exact).
    assert jnp.allclose(out, ref, atol=1e-3, rtol=1e-3), "mismatch vs reference"

    print("KERNEL_OK")
</pallas_src>

<mosaic_0001>
module attributes {stable_mosaic.version = 11 : i64} {
  func.func @_attention_kernel(%arg0: i32, %arg1: memref<32x32xf32, #tpu.memory_space<vmem>>, %arg2: memref<1x1x32xf32, #tpu.memory_space<vmem>>, %arg3: memref<1x8x32xf32, #tpu.memory_space<vmem>>, %arg4: memref<1x1x8xf32, #tpu.memory_space<vmem>>) attributes {dimension_semantics = [#tpu.dimension_semantics<parallel>], iteration_bounds = array<i64: 2>, scalar_prefetch = 0 : i64, scratch_operands = 0 : i64, tpu.core_type = #tpu.core_type<tc>, window_params = [{pipeline_mode = #tpu.pipeline_mode<synchronous>, transform_indices = @transform_0, window_bounds = array<i64: 32, 32>}, {transform_indices = @transform_1, window_bounds = array<i64: 1, 1, 32>}, {transform_indices = @transform_2, window_bounds = array<i64: 1, 8, 32>}, {transform_indices = @transform_3, window_bounds = array<i64: 1, 1, 8>}]} {
    %c0 = arith.constant 0 : index
    %c0_0 = arith.constant 0 : index
    %0 = vector.load %arg1[%c0, %c0_0] : memref<32x32xf32, #tpu.memory_space<vmem>>, vector<32x32xf32>
    %c0_1 = arith.constant 0 : index
    %c0_2 = arith.constant 0 : index
    %c0_3 = arith.constant 0 : index
    %1 = vector.load %arg2[%c0_1, %c0_2, %c0_3] : memref<1x1x32xf32, #tpu.memory_space<vmem>>, vector<1x1x32xf32>
    %2 = vector.shape_cast %1 : vector<1x1x32xf32> to vector<1x32xf32>
    %c0_4 = arith.constant 0 : index
    %c0_5 = arith.constant 0 : index
    %c0_6 = arith.constant 0 : index
    %3 = vector.load %arg3[%c0_4, %c0_5, %c0_6] : memref<1x8x32xf32, #tpu.memory_space<vmem>>, vector<1x8x32xf32>
    %cst = arith.constant dense<0.000000e+00> : vector<1x32xf32>
    %4 = tpu.matmul %2, %0, %cst {dimension_numbers = #tpu.dot_dimension_numbers<[1], [0], [0], [1], [0, 0, 1, 1], [], []>} : vector<1x32xf32>, vector<32x32xf32>, vector<1x32xf32> -> vector<1x32xf32>
    %5 = vector.shape_cast %4 : vector<1x32xf32> to vector<1x1x32xf32>
    "tpu.trace_start"() <{level = 10 : i32, message = "bke,ble->bkl"}> : () -> ()
    %cst_7 = arith.constant dense<0.000000e+00> : vector<1x1x8xf32>
    %6 = tpu.matmul %5, %3, %cst_7 {dimension_numbers = #tpu.dot_dimension_numbers<[2], [2], [1], [1], [0, 0, 0, 1, 1, 1], [0], [0]>} : vector<1x1x32xf32>, vector<1x8x32xf32>, vector<1x1x8xf32> -> vector<1x1x8xf32>
    "tpu.trace_stop"() : () -> ()
    %cst_8 = arith.constant dense<0xFF800000> : vector<1x1xf32>
    %7 = vector.multi_reduction <maximumf>, %6, %cst_8 [2] : vector<1x1x8xf32> to vector<1x1xf32>
    %8 = vector.shape_cast %7 : vector<1x1xf32> to vector<1x1x1xf32>
    %9 = vector.broadcast %8 : vector<1x1x1xf32> to vector<1x1x8xf32>
    %10 = arith.subf %6, %9 : vector<1x1x8xf32>
    %11 = math.exp %10 : vector<1x1x8xf32>
    %cst_9 = arith.constant dense<0.000000e+00> : vector<1x1xf32>
    %12 = vector.multi_reduction <add>, %11, %cst_9 [2] : vector<1x1x8xf32> to vector<1x1xf32>
    %13 = vector.shape_cast %12 : vector<1x1xf32> to vector<1x1x1xf32>
    %14 = tpu.reciprocal %13 {approx = true} : vector<1x1x1xf32> -> vector<1x1x1xf32>
    %15 = vector.broadcast %14 : vector<1x1x1xf32> to vector<1x1x8xf32>
    %16 = arith.mulf %11, %15 : vector<1x1x8xf32>
    %c0_10 = arith.constant 0 : index
    %c0_11 = arith.constant 0 : index
    %c0_12 = arith.constant 0 : index
    %17 = vector.load %arg4[%c0_10, %c0_11, %c0_12] : memref<1x1x8xf32, #tpu.memory_space<vmem>>, vector<1x1x8xf32>
    tpu.vector_store %arg4[%c0_10, %c0_11, %c0_12], %16 {strides = array<i32>} : memref<1x1x8xf32, #tpu.memory_space<vmem>>, vector<1x1x8xf32>,
    return
  }
  func.func @transform_0(%arg0: i32) -> (i32, i32) {
    %c0_i32 = arith.constant 0 : i32
    %c0_i32_0 = arith.constant 0 : i32
    %c0_i32_1 = arith.constant 0 : i32
    return %c0_i32, %c0_i32_0 : i32, i32
  }
  func.func @transform_1(%arg0: i32) -> (i32, i32, i32) {
    %c0_i32 = arith.constant 0 : i32
    %c0_i32_0 = arith.constant 0 : i32
    %c0_i32_1 = arith.constant 0 : i32
    return %arg0, %c0_i32, %c0_i32_0 : i32, i32, i32
  }
  func.func @transform_2(%arg0: i32) -> (i32, i32, i32) {
    %c0_i32 = arith.constant 0 : i32
    %c0_i32_0 = arith.constant 0 : i32
    %c0_i32_1 = arith.constant 0 : i32
    return %arg0, %c0_i32, %c0_i32_0 : i32, i32, i32
  }
  func.func @transform_3(%arg0: i32) -> (i32, i32, i32) {
    %c0_i32 = arith.constant 0 : i32
    %c0_i32_0 = arith.constant 0 : i32
    %c0_i32_1 = arith.constant 0 : i32
    return %arg0, %c0_i32, %c0_i32_0 : i32, i32, i32
  }
}

</mosaic_0001>

<bundles_post_ra>
// kernel: tpu_custom_call.1
= control target key start
LH: loop header
LB: loop body
LE: loop exit
PB: predicated region body
PF: predicated region fallthrough
CT: control target
= control target key end

     0   :  { %8 = vsyncpa [#allocation3], 0  ;;  %s956_s0 = inlined_call_operand.hbm [shape: f32[32,32], index: 0, kind: input, shape index: {}]   ;;  %s957_s1 = inlined_call_operand.vmem [shape: f32[2,1,32], index: 1, kind: input, shape index: {}]   ;;  %s958_s2 = inlined_call_operand.hbm [shape: f32[2,8,32], index: 2, kind: input, shape index: {}]   ;;  %s959_s3 = inlined_call_operand.hbm [shape: f32[2,1,8], index: 3, kind: output, shape index: {}]  }
   0x1   :  { %9 = vsyncpa [#allocation6], 0 }
   0x2   :  { %11 = vsyncpa [#allocation6 + $0x1], 0 }
   0x3   :  { %12 = vsyncpa [#allocation4], 0 }
   0x4   :  { %14 = vsyncpa [#allocation4 + $0x1], 0  ;;  %s751_s12 = smov 0   ;;  %s753_s13 = smov 0  }
   0x5   :  { %s755_s14 = smov 0   ;;  %s757_s15 = smov 0  }
   0x6 LB: > { %s772_s16 = sadd.s32 4294967295, %s721_s15   ;;  %s483_s17 = sadd.s32 4294967294, %s721_s15   ;;  %s721_s15 = sphi %s757_s15, %s979_s15   ;;  %s717_s14 = sphi %s755_s14, %s978_s14   ;;  %s713_s13 = sphi %s753_s13, %s977_s13   ;;  %s709_s12 = sphi %s751_s12, %s976_s12  }
   0x7   : > { %p87_p0 = scmp.ne.s32.totalorder %s713_s13, %s709_s12  ;;  %p960_p1 = scmp.eq.s32.totalorder %s772_s16, 0 }
   0x8   : > { %p117_p3 = scmp.eq.s32.totalorder %s483_s17, 1  ;;  %p484_p5 = scmp.ge.s32.totalorder %s721_s15, 1 }
   0x9   : > { %p781_p4 = por %p960_p1, %p87_p0  ;;  %p124_p7 = scmp.lt.s32.totalorder %s721_s15, 3 }
   0xa   : > { %p786_p6 = por %p117_p3, %p87_p0  ;;  %s723_s21 = smov [#allocation2]  }
   0xb   : > { %s963_s18 = scalar_select %p781_p4, 1, 0 }
   0xc   : > { %s964_s19 = scalar_select %p786_p6, 1, 0 }
   0xd   : > { %p791_p8 = pnand %p484_p5, %p124_p7  ;;  %s136_s22 = sshll.u32 %s723_s21, 4  ;;  %s795_s22 = int_to_ptr.vmem [resolvable:$true] %s136_s22 }
   0xe   : > { %s807_s24 = sadd.s32 1, %s721_s15   ;;  %s74_s25 = sadd.s32 1, %s717_s14 }
   0xf   : > { %s965_s20 = scalar_select %p791_p8, 1, 0 }
  0x10   : > { %p535_p9 = pneg %p791_p8  ;;  %s71_s26 = ssub.s32 %s721_s15, %s807_s24 }
  0x11   : > { %s593_s29 = scalar_lea.hbm %s956_s0, 512 }
  0x12   : > { %p802_p11 = pnand %p535_p9, %p960_p1  ;;  %p594_p12 = scmp.ne.s32.totalorder %s956_s0, %s593_s29 }
  0x13   : > { %p600_p5 = scmp.lt.u32.totalorder %s593_s29, %s956_s0 }
  0x14   : > { %p595_p13 = pneg %p802_p11 }
  0x16   : > { %p596_p0 = pnand %p595_p13, %p594_p12 }
  0x18   : > { %p597_p3 = pneg %p596_p0 }
  0x1a   : > { %p602_p7 = pnand %p600_p5, %p597_p3 }
  0x1c   : > { %605 = shalt.err (!%p602_p7)
}
  0x1d   : > { %s606_s7 = scalar_lea.vmem %s795_s22, 512  ;;  %p614_p2 = scmp.lt.s32.totalorder %s795_s22, %s795_s22 }
  0x1e   : > { %p607_p9 = scmp.ne.s32.totalorder %s795_s22, %s606_s7  ;;  %p615_p6 = scmp.lt.s32.totalorder %s606_s7, %s606_s7 }
  0x20   : > { %p609_p10 = pnand %p607_p9, %p595_p13  ;;  %p616_p4 = por %p615_p6, %p614_p2 }
  0x22   : > { %p610_p1 = pneg %p609_p10 }
  0x24   : > { %p617_p8 = pnand %p616_p4, %p610_p1 }
  0x26   : > { %620 = shalt.err (!%p617_p8)
}
  0x27   : > { %s724_s8 = smov 128   ;;  %s725_s9 = smov 8  }
  0x28   : > { %538 = dma.hbm_to_vmem [thread:$0]  (!%p802_p11), %s956_s0, 512, %s795_s22, [#allocation3], %s724_s8, %s724_s8, %s725_s9  }
  0x29   : > { %p72_p2 = scmp.eq.s32.totalorder %s71_s26, 0  ;;  %p81_p1 = scmp.ne.s32.totalorder %s717_s14, %s713_s13 }
  0x2a   : > { %p82_p4 = scmp.eq.s32.totalorder %s721_s15, 0  ;;  %p548_p6 = scmp.lt.s32.totalorder %s721_s15, 2 }
  0x2b   : > { %s838_s17 = scalar_select %p72_p2, %s717_s14, %s74_s25  }
  0x2c   : > { %p83_p8 = por %p82_p4, %p81_p1  ;;  %p967_p10 = scmp.eq.s32.totalorder %s772_s16, 1 }
  0x2d   : > { %s156_s27 = sand.u32 1, %s717_s14   ;;  %s488_s28 = sshll.u32 %s721_s15, 7 }
  0x2e   : > { %p842_p12 = por %p967_p10, %p81_p1  ;;  %s487_s29 = sshll.u32 %s156_s27, 3 }
  0x2f   : > { %s851_s4 = scalar_lea.hbm %s958_s2, %s488_s28  ;;  %s160_s22 = scalar_lea.vmem [#allocation5], %s487_s29 }
  0x30   : > { %s167_s25 = sshll.u32 %s160_s22, 4  ;;  %p853_p11 = pnand %p548_p6, %p83_p8  ;;  %s857_s25 = int_to_ptr.vmem [resolvable:$true] %s167_s25 }
  0x31   : > { %s157_s5 = scalar_lea.sflag [#allocation6], %s156_s27  ;;  %s621_s6 = scalar_lea.hbm %s851_s4, 128 }
  0x32   : > { %p622_p13 = scmp.ne.s32.totalorder %s851_s4, %s621_s6  ;;  %p623_p0 = pneg %p853_p11 }
  0x33   : > { %s626_s9 = scalar_lea.hbm %s958_s2, 256  ;;  %p627_p7 = scmp.lt.u32.totalorder %s851_s4, %s958_s2 }
  0x34   : > { %p624_p3 = pnand %p623_p0, %p622_p13  ;;  %p628_p9 = scmp.lt.u32.totalorder %s626_s9, %s621_s6 }
  0x35   : > { %p630_p1 = scmp.lt.u32.totalorder %s621_s6, %s851_s4 }
  0x36   : > { %p625_p5 = pneg %p624_p3  ;;  %p629_p2 = por %p628_p9, %p627_p7 }
  0x38   : > { %p631_p4 = por %p630_p1, %p629_p2 }
  0x3a   : > { %p632_p6 = pnand %p631_p4, %p625_p5 }
  0x3c   : > { %635 = shalt.err (!%p632_p6)
}
  0x3d   : > { %s636_s27 = scalar_lea.vmem %s857_s25, 128  ;;  %s726_s28 = smov [#allocation5]  }
  0x3e   : > { %p637_p8 = scmp.ne.s32.totalorder %s857_s25, %s636_s27  ;;  %s641_s29 = sshll.u32 %s726_s28, 4  ;;  %s642_s29 = int_to_ptr.vmem [resolvable:$false] %s641_s29 }
  0x3f   : > { %s643_s23 = scalar_lea.vmem %s642_s29, 256  ;;  %p644_p3 = scmp.lt.s32.totalorder %s857_s25, %s642_s29 }
  0x40   : > { %p639_p10 = pnand %p637_p8, %p623_p0  ;;  %p645_p7 = scmp.lt.s32.totalorder %s643_s23, %s636_s27 }
  0x42   : > { %p640_p13 = pneg %p639_p10  ;;  %p646_p9 = por %p645_p7, %p644_p3 }
  0x44   : > { %p647_p2 = pnand %p646_p9, %p640_p13 }
  0x46   : > { %650 = shalt.err (!%p647_p2)
}
  0x47   : > { %542 = dma.hbm_to_vmem [thread:$0]  (!%p853_p11), %s851_s4, 128, %s857_s25, %s157_s5  }
  0x48   : > { %p970_p5 = scmp.ne.s32.totalorder %s965_s20, 0 }
  0x49   : > { %p971_p0 = scmp.eq.s32.totalorder (!%p970_p5), %s772_s16, 0 }
  0x4a   : > { %176 = sbr.rel (%p970_p5) target bundleno = 849 (0x351), region = 32 }
  0x51   : > { %696 = dma.done.wait (%p971_p0), [#allocation3], 512   ;;  %p972_p1 = pmov %p971_p0 }
  0x52   : > { %s891_s30 = sand.u32 1, %s713_s13   ;;  %p973_p4 = scmp.ne.s32.totalorder %s963_s18, 0 }
  0x53   : > { %698 = vsyncadd (%p972_p1), [#allocation3], 4294966784  ;;  %s491_s22 = sshll.u32 %s891_s30, 3  ;;  %s183_s26 = scalar_lea.sflag [#allocation6], %s891_s30 }
  0x54   : > { %s186_s6 = scalar_lea.vmem [#allocation5], %s491_s22 }
  0x55   : > { %700 = dma.done.wait (%p973_p4), %s183_s26, 128  }
  0x56   : > { %702 = vsyncadd (%p973_p4), %s183_s26, 4294967168  ;;  %v727_v0 = vmov 0.0|0.0   ;;  %vm728_vm0 = vmmov 0   ;;  %v729_v1 = vmov 0.0   ;;  %p211_p11 = scmp.lt.s32.totalorder %s772_s16, 1  ;;  %v214_v2 = vld [vmem:[#allocation2] sm:$0xff] }
  0x57   : > { %521 = vmatprep.subr.bf16.mxu0 %v727_v0  ;;  %513 = vmatprep.mubr.msk.f32.mxu0 %vm728_vm0, %v729_v1  ;;  %v215_v3 = vld [vmem:[#allocation2 + $0x8] sm:$0xff]  ;;  %v216_v4 = vld [vmem:[#allocation2 + $0x10] sm:$0xff]  ;;  %v217_v6 = vld [vmem:[#allocation2 + $0x18] sm:$0xff]  ;;  %vm220_vm1 = vcmask 261120   ;;  %vm370_vm2 = vcmask 57344   ;;  %s495_s5 = sshll.u32 %s772_s16, 4 }
  0x58   : > { %516 = vmatprep.subr.mxu1 %v729_v1  ;;  %518 = vmatprep.mubr.msk.f32.mxu1 %vm728_vm0, %v729_v1  ;;  %s212_s20 = scalar_select %p211_p11, %s772_s16, 1  ;;  %v522_v5 = vpack.c.bf16 %v215_v3, %v214_v2  ;;  %v219_v7 = vld [vmem:[%s186_s6] sm:$0xff]  ;;  %v525_v8 = vpack.c.bf16 %v217_v6, %v216_v4 }
  0x59   : > { %517 = vmatpush3.xpose.msk.msra.mxu1 %vm220_vm1, %v219_v7  ;;  %s210_s7 = scalar_lea.vmem [#allocation7], %s891_s30  ;;  %s911_s11 = scalar_lea.hbm %s959_s3, %s495_s5 }
  0x5a   : > { %523 = vmatpush3.bf16.msra.mxu0 %v522_v5  ;;  %s213_s25 = scalar_lea.vmem %s957_s1, %s212_s20  ;;  %s396_s8 = sshll.u32 %s210_s7, 4  ;;  %s913_s8 = int_to_ptr.vmem [resolvable:$true] %s396_s8 }
  0x5b   : > { %524 = vmatprep.subr.bf16.mxu0 %v727_v0  ;;  %v218_v9 = vld [vmem:[%s213_s25] sm:$0x1]  ;;  %s384_s27 = scalar_lea.sflag [#allocation4], %s891_s30  ;;  %s651_s28 = scalar_lea.vmem %s913_s8, 16 }
  0x5c   : > { %p652_p6 = scmp.ne.s32.totalorder %s913_s8, %s651_s28  ;;  %s730_s16 = smov [#allocation7]  }
  0x5d   : > { %s655_s29 = sshll.u32 %s730_s16, 4  ;;  %s656_s29 = int_to_ptr.vmem [resolvable:$false] %s655_s29 }
  0x5e   : > { %526 = vmatpush3.bf16.msra.mxu0 %v525_v8  ;;  %p653_p8 = pnand %p652_p6, %p842_p12  ;;  %s657_s23 = scalar_lea.vmem %s656_s29, 32 }
  0x5f   : > { %p658_p13 = scmp.lt.s32.totalorder %s913_s8, %s656_s29  ;;  %p659_p3 = scmp.lt.s32.totalorder %s657_s23, %s651_s28 }
  0x60   : > { %p654_p10 = pneg %p653_p8 }
  0x61   : > { %514 = vmatmul.mubr.msk.f32.vlgmr.msra.gmra.mrb[0].mxu0 %vm220_vm1, %v218_v9  ;;  %p660_p7 = por %p659_p3, %p658_p13 }
  0x63   : > { %p661_p9 = pnand %p660_p7, %p654_p10 }
 0x134   : > { %v290_v10 = vpop.f32.mrb[0].mxu0 }
 0x135   : > { %v515_v11 = vpop.f32.mrb[1].mxu0  ;;  %519 = vmatmul.mubr.msk.f32.vlgmr.msra.gmra.mrb[0].mxu1 %vm220_vm1, %v290_v10 }
 0x208   : > { %v366_v12 = vpop.f32.mrb[0].mxu1 }
 0x209   : > { %v520_v13 = vpop.f32.mrb[1].mxu1  ;;  %v371_v14 = vsel %vm370_vm2, %v366_v12, -inf }
 0x20a   : > { %372 = vmax.xlane.f32.xlu0 %v371_v14 }
 0x297   : > { %v373_v15 = vpop.xlane.xlu0 %372 }
 0x298   : > { %v374_v16 = vsub.f32 %v366_v12, %v373_v15 }
 0x29a   : > { %v375_v17 = vmul.f32 1.442695, %v374_v16 }
 0x29c   : > { %589 = vpow2.f32 %v375_v17 }
 0x2a6   : > { %v590_v18 = vpop.eup %589 }
 0x2a7   : > { %v377_v19 = vsel %vm370_vm2, %v590_v18, 0.0 }
 0x2a8   : > { %378 = vadd.xlane.f32.xlu0 %v377_v19 }
 0x335   : > { %v379_v20 = vpop.xlane.xlu0 %378 }
 0x336   : > { %591 = vrcp.f32 %v379_v20 }
 0x340   : > { %v592_v21 = vpop.eup %591 }
 0x341   : > { %v381_v22 = vmul.f32 %v592_v21, %v590_v18 }
 0x343   : > { %382 = vst.msk [vmem:[%s210_s7] sm:$0x1] %vm370_vm2, %v381_v22 }
 0x344   : > { %664 = shalt.err (!%p661_p9)
}
 0x345   : > { %s665_s30 = scalar_lea.hbm %s911_s11, 16  ;;  %s669_s6 = scalar_lea.hbm %s959_s3, 32 }
 0x346   : > { %p666_p2 = scmp.ne.s32.totalorder %s911_s11, %s665_s30  ;;  %p670_p1 = scmp.lt.u32.totalorder %s911_s11, %s959_s3 }
 0x347   : > { %p671_p4 = scmp.lt.u32.totalorder %s669_s6, %s665_s30  ;;  %p673_p6 = scmp.lt.u32.totalorder %s665_s30, %s911_s11 }
 0x348   : > { %p667_p5 = pnand %p666_p2, %p842_p12 }
 0x349   : > { %p672_p11 = por %p671_p4, %p670_p1 }
 0x34a   : > { %p668_p0 = pneg %p667_p5 }
 0x34b   : > { %p674_p8 = por %p673_p6, %p672_p11 }
 0x34d   : > { %p675_p10 = pnand %p674_p8, %p668_p0 }
 0x34f   : > { %678 = shalt.err (!%p675_p10)
}
 0x350   : > { %533 = dma.vmem_to_hbm [thread:$0]  (%p842_p12), %s913_s8, 16, %s911_s11, %s384_s27  }
 0x351 PF: > { %s408_s4 = sand.u32 1, %s709_s12   ;;  %p974_p13 = scmp.ne.s32.totalorder %s964_s19, 0 }
 0x352   : > { %p975_p3 = scmp.ge.s32.totalorder %s721_s15, 2  ;;  %s409_s25 = scalar_lea.sflag [#allocation4], %s408_s4 }
 0x354   : > { %p544_p7 = pnand %p975_p3, %p974_p13 }
 0x356   : > { %704 = dma.done.wait (!%p544_p7), %s409_s25, 16  }
 0x357   : > { %706 = vsyncadd (!%p544_p7), %s409_s25, 4294967280  ;;  %p17_p9 = scmp.ge.s32.totalorder %s807_s24, 4   ;;  %s976_s12 = smov %s713_s13 }
 0x358   : > { %s977_s13 = smov %s717_s14  ;;  %s978_s14 = smov %s838_s17 }
 0x359   : > { %s979_s15 = smov %s807_s24  ;;  %19 = sbr.rel (!%p17_p9) target bundleno = 6 (0x6), region = 85 }
 0x360   :  { %413 = vsyncpa [#allocation3], 1 }
 0x361   :  { %415 = vsyncpa [#allocation3 + $0x1], 1 }
 0x362   :  { %416 = vsyncpa [#allocation6], 1 }
 0x363   :  { %418 = vsyncpa [#allocation6 + $0x1], 1 }
 0x364   :  { %419 = vsyncpa [#allocation4], 1 }
 0x365   :  { %421 = vsyncpa [#allocation4 + $0x1], 1 }

</bundles_post_ra>
